<compile_context>
chip_gen: v7x
topology: tpu7x:2x2x1
jax: 0.10.0
libtpu: 0.0.40
codegen_flags: <defaults>
</compile_context>

<pallas_src>
import math

import jax
import jax.numpy as jnp
from jax.experimental import pallas as pl
from jax.experimental.pallas import tpu as pltpu


def _scale_shift_kernel(x_ref, scale_ref, shift_ref, o_ref):
    # Pure elementwise x*scale+shift; scale/shift are (1, lane) and broadcast
    # over the row dimension.  Compute stays in the input dtype.
    o_ref[...] = x_ref[...] * scale_ref[...] + shift_ref[...]


def layernorm(x, scale, shift):
    """x: (..., emb_dim); scale, shift: (emb_dim,).

    Returns x*scale+shift, matching the reference module's forward (whose
    normalization statistics are dead code).
    """
    orig_shape = x.shape
    emb_dim = orig_shape[-1]
    total = int(x.size)
    dtype = x.dtype
    itemsize = jnp.dtype(dtype).itemsize

    # Sublane multiple for this dtype: 8 (f32), 16 (bf16), 32 (int8/fp8).
    m = max(8, 32 // itemsize)

    # ---- Per-generation block sizing from VMEM capacity -------------------
    try:
        vmem_cap = int(pltpu.get_tpu_info().vmem_capacity_bytes)
    except Exception:  # interpret mode / older jax: assume 128 MiB part
        vmem_cap = 128 << 20
    # Raise scoped VMEM to 32 MiB (safe on v5e/v6e: 128 MiB physical; equal to
    # the v7x default on its 64 MiB part).
    vmem_limit = int(min(32 << 20, max(16 << 20, vmem_cap // 2)))
    # x block + out block, double-buffered (~4x block bytes) + tiny scale/shift
    # must stay under the scoped limit -> /6 leaves comfortable headroom.
    block_bytes = vmem_limit // 6

    # ---- Lane-dense packing ------------------------------------------------
    # Repack the flat elements into rows of lcm(emb_dim, 128) lanes so every
    # vreg carries 128 useful lanes and all stores are unmasked.  The op is
    # elementwise per (row, feature), so this is pure layout plumbing.
    lane_cap = max(128, min(16384, (block_bytes // (m * itemsize)) // 128 * 128))
    lane = math.lcm(emb_dim, 128)
    if lane > lane_cap:
        # TODO(synk): for emb_dims with huge lcm(emb_dim,128), pad emb_dim up
        # to a multiple of 128 with a masked tail instead of this (correct but
        # masked-store) full-last-dim fallback.
        lane = emb_dim
    reps = lane // emb_dim

    n_rows = total // lane
    rem = total - n_rows * lane  # < lane

    flat = x.reshape(-1)
    if rem:
        # Tail pad of < lane elements; skipped entirely when total % lane == 0
        # (the common case), so the main path adds zero extra HBM traffic.
        flat = jnp.pad(flat, (0, lane - rem))
        n_rows_p = n_rows + 1
    else:
        n_rows_p = n_rows
    x2 = flat.reshape(n_rows_p, lane)

    scale2 = jnp.tile(scale.astype(dtype), reps).reshape(1, lane)
    shift2 = jnp.tile(shift.astype(dtype), reps).reshape(1, lane)

    # ---- Row tile: as many rows as fit the per-block byte budget ----------
    rows_budget = max(m, (block_bytes // (lane * itemsize)) // m * m)
    rows_needed = ((n_rows_p + m - 1) // m) * m  # don't over-allocate tiny inputs
    row_tile = int(min(rows_budget, rows_needed))

    grid = (pl.cdiv(n_rows_p, row_tile),)  # last block may be partial; Pallas clips

    out = pl.pallas_call(
        _scale_shift_kernel,
        out_shape=jax.ShapeDtypeStruct((n_rows_p, lane), dtype),
        grid_spec=pltpu.PrefetchScalarGridSpec(
            num_scalar_prefetch=0,
            grid=grid,
            in_specs=[
                pl.BlockSpec((row_tile, lane), lambda i: (i, 0)),
                pl.BlockSpec((1, lane), lambda i: (0, 0)),
                pl.BlockSpec((1, lane), lambda i: (0, 0)),
            ],
            out_specs=pl.BlockSpec((row_tile, lane), lambda i: (i, 0)),
        ),
        compiler_params=pltpu.CompilerParams(
            dimension_semantics=("parallel",),
            vmem_limit_bytes=vmem_limit,
        ),
    )(x2, scale2, shift2)

    out_flat = out.reshape(-1)
    if rem:
        out_flat = out_flat[:total]
    return out_flat.reshape(orig_shape)


if __name__ == "__main__":
    key = jax.random.PRNGKey(0)
    batch, seq, emb_dim = 2, 8, 32

    x = jax.random.normal(key, (batch, seq, emb_dim), dtype=jnp.float32)
    # nn.Parameter(torch.ones(emb_dim)) / nn.Parameter(torch.zeros(emb_dim))
    scale = jnp.ones((emb_dim,), dtype=jnp.float32)
    shift = jnp.zeros((emb_dim,), dtype=jnp.float32)

    out = layernorm(x, scale, shift)
    out = jax.block_until_ready(out)

    # Reference (pure JAX) check of the exact PyTorch forward semantics:
    # the module returns x*scale+shift (its normalization result is unused).
    ref = x * scale + shift
    assert out.shape == x.shape and out.dtype == x.dtype
    assert jnp.allclose(out, ref, atol=1e-6, rtol=1e-6)

    print("KERNEL_OK")
</pallas_src>

<mosaic_0001>
module attributes {stable_mosaic.version = 11 : i64} {
  func.func @_scale_shift_kernel(%arg0: i32, %arg1: memref<8x128xf32, #tpu.memory_space<vmem>>, %arg2: memref<1x128xf32, #tpu.memory_space<vmem>>, %arg3: memref<1x128xf32, #tpu.memory_space<vmem>>, %arg4: memref<8x128xf32, #tpu.memory_space<vmem>>) attributes {dimension_semantics = [#tpu.dimension_semantics<parallel>], iteration_bounds = array<i64: 1>, scalar_prefetch = 0 : i64, scratch_operands = 0 : i64, tpu.core_type = #tpu.core_type<tc>, window_params = [{transform_indices = @transform_0, window_bounds = array<i64: 8, 128>}, {pipeline_mode = #tpu.pipeline_mode<synchronous>, transform_indices = @transform_1, window_bounds = array<i64: 1, 128>}, {pipeline_mode = #tpu.pipeline_mode<synchronous>, transform_indices = @transform_2, window_bounds = array<i64: 1, 128>}, {transform_indices = @transform_3, window_bounds = array<i64: 8, 128>}]} {
    %c0 = arith.constant 0 : index
    %c0_0 = arith.constant 0 : index
    %0 = vector.load %arg1[%c0, %c0_0] : memref<8x128xf32, #tpu.memory_space<vmem>>, vector<8x128xf32>
    %c0_1 = arith.constant 0 : index
    %c0_2 = arith.constant 0 : index
    %1 = vector.load %arg2[%c0_1, %c0_2] : memref<1x128xf32, #tpu.memory_space<vmem>>, vector<1x128xf32>
    %2 = vector.broadcast %1 : vector<1x128xf32> to vector<8x128xf32>
    %3 = arith.mulf %0, %2 : vector<8x128xf32>
    %c0_3 = arith.constant 0 : index
    %c0_4 = arith.constant 0 : index
    %4 = vector.load %arg3[%c0_3, %c0_4] : memref<1x128xf32, #tpu.memory_space<vmem>>, vector<1x128xf32>
    %5 = vector.broadcast %4 : vector<1x128xf32> to vector<8x128xf32>
    %6 = arith.addf %3, %5 : vector<8x128xf32>
    %c0_5 = arith.constant 0 : index
    %c0_6 = arith.constant 0 : index
    %7 = vector.load %arg4[%c0_5, %c0_6] : memref<8x128xf32, #tpu.memory_space<vmem>>, vector<8x128xf32>
    tpu.vector_store %arg4[%c0_5, %c0_6], %6 {strides = array<i32>} : memref<8x128xf32, #tpu.memory_space<vmem>>, vector<8x128xf32>,
    return
  }
  func.func @transform_0(%arg0: i32) -> (i32, i32) {
    %c0_i32 = arith.constant 0 : i32
    %c0_i32_0 = arith.constant 0 : i32
    return %arg0, %c0_i32 : i32, i32
  }
  func.func @transform_1(%arg0: i32) -> (i32, i32) {
    %c0_i32 = arith.constant 0 : i32
    %c0_i32_0 = arith.constant 0 : i32
    %c0_i32_1 = arith.constant 0 : i32
    return %c0_i32, %c0_i32_0 : i32, i32
  }
  func.func @transform_2(%arg0: i32) -> (i32, i32) {
    %c0_i32 = arith.constant 0 : i32
    %c0_i32_0 = arith.constant 0 : i32
    %c0_i32_1 = arith.constant 0 : i32
    return %c0_i32, %c0_i32_0 : i32, i32
  }
  func.func @transform_3(%arg0: i32) -> (i32, i32) {
    %c0_i32 = arith.constant 0 : i32
    %c0_i32_0 = arith.constant 0 : i32
    return %arg0, %c0_i32 : i32, i32
  }
}

</mosaic_0001>

<bundles_post_ra>
// kernel: tpu_custom_call.1
= control target key start
LH: loop header
LB: loop body
LE: loop exit
PB: predicated region body
PF: predicated region fallthrough
CT: control target
= control target key end

     0   :  { %8 = vsyncpa [#allocation3], 0  ;;  %s178_s0 = inlined_call_operand.hbm [shape: f32[4,128], index: 0, kind: input, shape index: {}]   ;;  %s179_s1 = inlined_call_operand.vmem [shape: f32[1,128], index: 1, kind: input, shape index: {}]   ;;  %s180_s2 = inlined_call_operand.vmem [shape: f32[1,128], index: 2, kind: input, shape index: {}]   ;;  %s181_s3 = inlined_call_operand.hbm [shape: f32[4,128], index: 3, kind: output, shape index: {}]  }
   0x1   :  { %9 = vsyncpa [#allocation4], 0 }
   0x2   :  { %14 = vsyncadd [#allocation3], 64  ;;  %s118_s12 = smov [#allocation2]   ;;  %s70_s16 = scalar_lea.hbm %s178_s0, 64 }
   0x3   :  { %s15_s13 = sshll.u32 %s118_s12, 4  ;;  %p71_p0 = scmp.ne.s32.totalorder %s178_s0, %s70_s16  ;;  %s16_s13 = int_to_ptr.vmem [resolvable:$true] %s15_s13 }
   0x4   :  { %p74_p1 = scmp.lt.u32.totalorder %s70_s16, %s178_s0 }
   0x6   :  { %p76_p2 = pnand %p74_p1, %p71_p0 }
   0x8   :  { %79 = shalt.err (!%p76_p2)
}
   0x9   :  { %s80_s21 = scalar_lea.vmem %s16_s13, 64  ;;  %s84_s22 = scalar_lea.vmem %s16_s13, 128 }
   0xa   :  { %p81_p3 = scmp.ne.s32.totalorder %s16_s13, %s80_s21  ;;  %p85_p4 = scmp.lt.s32.totalorder %s16_s13, %s16_s13 }
   0xb   :  { %p86_p5 = scmp.lt.s32.totalorder %s84_s22, %s80_s21 }
   0xd   :  { %p87_p6 = por %p86_p5, %p85_p4 }
   0xf   :  { %p88_p7 = pnand %p87_p6, %p81_p3 }
  0x11   :  { %91 = shalt.err (!%p88_p7)
}
  0x12   :  { %s119_s23 = smov 64   ;;  %s120_s24 = smov 4  }
  0x13   :  { %21 = dma.hbm_to_vmem [thread:$0]  %s178_s0, 64, %s16_s13, [#allocation3], %s119_s23, %s119_s23, %s120_s24  }
  0x14   :  { %114 = dma.done.wait [#allocation3], 128  }
  0x15   :  { %115 = vsyncadd [#allocation3], 4294967168  ;;  %v29_v0 = vld [vmem:[#allocation2] sm:$0xff] }
  0x16   :  { %v64_v1 = vld [vmem:[%s179_s1] ss:$0 sm:$0xff] }
  0x17   :  { %v65_v2 = vld [vmem:[%s180_s2] ss:$0 sm:$0xff]  ;;  %v37_v3 = vmul.f32 %v64_v1, %v29_v0 }
  0x19   :  { %v45_v4 = vadd.f32 %v65_v2, %v37_v3 }
  0x1b   :  { %46 = vst [vmem:[#allocation5] sm:$0xff] %v45_v4 }
  0x1c   :  { %51 = vsyncadd [#allocation4], 64  ;;  %s121_s4 = smov [#allocation5]  }
  0x1d   :  { %s52_s5 = sshll.u32 %s121_s4, 4  ;;  %s53_s5 = int_to_ptr.vmem [resolvable:$true] %s52_s5 }
  0x1e   :  { %s92_s6 = scalar_lea.vmem %s53_s5, 64  ;;  %s96_s0 = scalar_lea.vmem %s53_s5, 128 }
  0x1f   :  { %p93_p8 = scmp.ne.s32.totalorder %s53_s5, %s92_s6  ;;  %p97_p9 = scmp.lt.s32.totalorder %s53_s5, %s53_s5 }
  0x20   :  { %p98_p10 = scmp.lt.s32.totalorder %s96_s0, %s92_s6 }
  0x22   :  { %p99_p11 = por %p98_p10, %p97_p9 }
  0x24   :  { %p100_p12 = pnand %p99_p11, %p93_p8 }
  0x26   :  { %103 = shalt.err (!%p100_p12)
}
  0x27   :  { %s104_s8 = scalar_lea.hbm %s181_s3, 64 }
  0x28   :  { %p105_p13 = scmp.ne.s32.totalorder %s181_s3, %s104_s8  ;;  %p108_p0 = scmp.lt.u32.totalorder %s104_s8, %s181_s3 }
  0x2a   :  { %p110_p1 = pnand %p108_p0, %p105_p13 }
  0x2c   :  { %113 = shalt.err (!%p110_p1)
}
  0x2d   :  { %58 = dma.vmem_to_hbm [thread:$0]  %s53_s5, 64, %s181_s3, [#allocation4], %s119_s23, %s119_s23, %s120_s24  }
  0x2e   :  { %116 = dma.done.wait [#allocation4], 128  }
  0x2f   :  { %117 = vsyncadd [#allocation4], 4294967168 }
  0x30   :  { %62 = vsyncpa [#allocation3], 1 }
  0x31   :  { %63 = vsyncpa [#allocation4], 1 }

</bundles_post_ra>
